<compile_context>
chip_gen: v5e
topology: v5e:2x2
jax: 0.10.0
libtpu: 0.0.40
codegen_flags: <defaults>
</compile_context>

<pallas_src>
import functools
import math

import numpy as np

import jax
import jax.numpy as jnp
from jax.experimental import pallas as pl
from jax.experimental.pallas import tpu as pltpu


# ----------------------------------------------------------------------------
# Strided-roll capability / direction probe (runs once per L, tiny kernel).
# ----------------------------------------------------------------------------
@functools.lru_cache(maxsize=None)
def _strided_roll_mode(L):
    """Returns 'np' / 'inv' / 'masked' describing how pltpu.roll(stride=1) behaves."""
    if L < 2:
        return "np"

    def probe_kernel(x_ref, o_ref):
        o_ref[...] = pltpu.roll(x_ref[...], shift=0, axis=1, stride=1, stride_axis=0)

    x = np.arange(L * L, dtype=np.float32).reshape(L, L)
    try:
        y = pl.pallas_call(
            probe_kernel,
            out_shape=jax.ShapeDtypeStruct((L, L), jnp.float32),
        )(jnp.asarray(x))
        y = np.asarray(jax.device_get(y))
    except Exception:
        return "masked"                       # strided roll does not lower here
    ref_np = np.stack([np.roll(x[u], u) for u in range(L)], axis=0)    # out[u,j]=x[u,(j-u)%L]
    ref_inv = np.stack([np.roll(x[u], -u) for u in range(L)], axis=0)  # out[u,j]=x[u,(j+u)%L]
    if np.array_equal(y, ref_np):
        return "np"
    if np.array_equal(y, ref_inv):
        return "inv"
    return "masked"


def _pick_bt(b, l, d):
    """Batch sub-tile: amortize ~0.35us/grid-step overhead for small (L, D)."""
    cap = max(1, (2 * 1024 * 1024) // max(1, l * d * 4))   # <= ~2 MiB per input block
    cap = min(cap, 8, b)                                    # bounded in-kernel unroll
    for bt in range(cap, 0, -1):
        if b % bt == 0:
            return bt
    return 1


# ----------------------------------------------------------------------------
# Kernel 1: channel-mean circular cross-correlation.
# ----------------------------------------------------------------------------
def _corr_mean_kernel(q_ref, k_ref, mean_ref, *scratch, bt, mode, dot_dtype):
    L = q_ref.shape[1]
    D = q_ref.shape[2]
    inv_d = 1.0 / D

    for j in range(bt):                                   # small static unroll
        q = q_ref[j]                                       # (L, D)
        k = k_ref[j]                                       # (L, D) (pre-permuted in 'np' mode)
        if dot_dtype is not None:                          # optional bf16 MXU operands
            q = q.astype(dot_dtype)
            k = k.astype(dot_dtype)
        # One MXU matmul, f32 accumulation: C[s, t] = <q[s, :], k[t, :]>.
        c = jax.lax.dot_general(q, k, (((1,), (1,)), ((), ())),
                                preferred_element_type=jnp.float32)   # (L, L)

        if mode == "masked":
            # Fallback: doubled Gram matrix + masked diagonal-band accumulation
            # carried as a jnp value (no VMEM read-modify-write).
            cdbl_ref, = scratch
            cdbl_ref[0:L, :] = c
            cdbl_ref[L:2 * L, :] = c
            lane = jax.lax.broadcasted_iota(jnp.int32, (L, L), 1)

            def body(t, acc):
                sl = cdbl_ref[pl.ds(t, L), :]              # sl[tau, :] = C[(tau+t)%L, :]
                return acc + jnp.where(lane == t, sl, 0.0)

            band = jax.lax.fori_loop(0, L, body, jnp.zeros((L, L), jnp.float32))
            mean_ref[j] = jnp.sum(band, axis=1, keepdims=True) * inv_d   # (L, 1)
        else:
            # Single strided XLU roll aligns the wrapped diagonals:
            #   band[u, jj] = C[u, (jj -/+ u) % L]   (direction picked by probe;
            #   the wrapper feeds a permuted k / permutes the output to match).
            band = pltpu.roll(c, shift=0, axis=1, stride=1, stride_axis=0)
            # Sublane reduction -> lane-dense (1, L) output row.
            mean_ref[j] = jnp.sum(band, axis=0, keepdims=True) * inv_d


# ----------------------------------------------------------------------------
# Kernel 2: time-delay aggregation.
# ----------------------------------------------------------------------------
def _agg_kernel(idx_ref, w_ref, v_ref, out_ref, vdbl_ref, *, top_k, bt):
    """out[b] = sum_i roll(value[b], -idx[i], axis=L) * w[b, i] (jnp carry, 1 store)."""
    g = pl.program_id(0)
    L = v_ref.shape[1]

    for j in range(bt):
        v = v_ref[j]                                       # (L, D)
        # Doubled value buffer -> circular shift via contiguous dynamic slice.
        # TODO(synk): replace with a dynamic-shift pltpu.roll (XLU) once its
        # direction/lowering is probed like the strided roll, saving 2*L*D stores.
        vdbl_ref[0:L, :] = v
        vdbl_ref[L:2 * L, :] = v

        base = (g * bt + j) * top_k
        acc = None
        for i in range(top_k):                             # top_k is small & static
            shift = idx_ref[i]                             # scalar delay (SMEM)
            rolled = vdbl_ref[pl.ds(shift, L), :]          # == torch.roll(v, -shift, 0)
            term = rolled.astype(jnp.float32) * w_ref[base + i]
            acc = term if acc is None else acc + term
        if acc is None:
            acc = jnp.zeros(v.shape, jnp.float32)
        out_ref[j] = acc.astype(out_ref.dtype)             # single final store


# ----------------------------------------------------------------------------
# Forward wrapper.
# ----------------------------------------------------------------------------
def auto_correlation_forward(query, key, value, *, heads, factor, flag,
                             qk_dot_dtype=None):
    """Pallas implementation of AutoCorrelation.forward.

    qk_dot_dtype: set to jnp.bfloat16 on v6e/v7x for native-MXU throughput on
    the Gram matmul (accumulation stays f32); None keeps full f32 operands.
    Note: 'train' and 'test' aggregation paths are mathematically identical
    (delay selection from the batch-mean correlation + circular shift), so one
    kernel covers both flags.
    """
    if flag not in ("train", "test"):
        raise ValueError("The flag should be set to either 'train' or 'test'.")
    del heads  # shape attribute only; unused in the forward math

    q_b, q_l, q_h, q_c = query.shape
    v_l = value.shape[1]
    if q_l > v_l:
        pad = jnp.zeros((q_b, q_l - v_l, q_h, q_c), value.dtype)
        value = jnp.concatenate([value, pad], axis=1)
        key = jnp.concatenate([key, pad], axis=1)
    else:
        value = value[:, :q_l]
        key = key[:, :q_l]

    B, L, H, C = q_b, q_l, q_h, q_c
    D = H * C
    q2 = query.reshape(B, L, D)
    k2 = key.reshape(B, L, D)
    v2 = value.reshape(B, L, D)

    top_k = int(factor * math.log(L))
    if top_k <= 0:                                         # parity with the reference
        return jnp.zeros((B, L, H, C), value.dtype)

    # ---- kernel 1: channel-mean circular cross-correlation (MXU + XLU) ------
    mode = _strided_roll_mode(L)
    perm = (L - np.arange(L)) % L                          # perm[0]=0, perm[x]=L-x
    k_feed = jnp.take(k2, perm, axis=1) if mode == "np" else k2

    bt = _pick_bt(B, L, D)
    lane_dense = mode != "masked"
    out_shape1 = (B, 1, L) if lane_dense else (B, L, 1)
    out_block1 = (bt, 1, L) if lane_dense else (bt, L, 1)
    scratch1 = [] if lane_dense else [pltpu.VMEM((2 * L, L), jnp.float32)]

    mean3 = pl.pallas_call(
        functools.partial(_corr_mean_kernel, bt=bt, mode=mode, dot_dtype=qk_dot_dtype),
        out_shape=jax.ShapeDtypeStruct(out_shape1, jnp.float32),
        grid=(B // bt,),
        in_specs=[
            pl.BlockSpec((bt, L, D), lambda b: (b, 0, 0)),
            pl.BlockSpec((bt, L, D), lambda b: (b, 0, 0)),
        ],
        out_specs=pl.BlockSpec(out_block1, lambda b: (b, 0, 0)),
        scratch_shapes=scratch1,
        compiler_params=pltpu.CompilerParams(dimension_semantics=("parallel",)),
    )(q2, k_feed)
    mean_value = mean3[:, 0, :] if lane_dense else mean3[:, :, 0]   # (B, L)
    if mode == "inv":
        mean_value = mean_value[:, perm]                   # un-reverse delay axis

    # ---- glue: top-k delay selection + softmax weights (tiny, data-dependent)
    batch_mean = jnp.mean(mean_value, axis=0)                        # (L,)
    _, index_topk = jax.lax.top_k(batch_mean, top_k)                 # (top_k,)
    weights_topk = jnp.take(mean_value, index_topk, axis=1)          # (B, top_k)
    weighted = jax.nn.softmax(weights_topk, axis=-1)                 # (B, top_k)

    # ---- kernel 2: time-delay aggregation ------------------------------------
    # TODO(synk): add a second 'parallel' grid axis over D tiles so both v7x
    # TensorCores stay busy when B is small.
    agg = pl.pallas_call(
        functools.partial(_agg_kernel, top_k=top_k, bt=bt),
        out_shape=jax.ShapeDtypeStruct((B, L, D), value.dtype),
        grid=(B // bt,),
        in_specs=[
            pl.BlockSpec(memory_space=pltpu.MemorySpace.SMEM),       # idx   (top_k,)
            pl.BlockSpec(memory_space=pltpu.MemorySpace.SMEM),       # w     (B*top_k,)
            pl.BlockSpec((bt, L, D), lambda b: (b, 0, 0)),           # value
        ],
        out_specs=pl.BlockSpec((bt, L, D), lambda b: (b, 0, 0)),
        scratch_shapes=[pltpu.VMEM((2 * L, D), value.dtype)],        # doubled value
        compiler_params=pltpu.CompilerParams(dimension_semantics=("parallel",)),
    )(index_topk.astype(jnp.int32),
      weighted.astype(jnp.float32).reshape(-1),
      v2)

    return agg.reshape(B, L, H, C)


# ----------------------------------------------------------------------------
# Pure-JAX reference (mirrors the PyTorch module, roll-based circular corr).
# ----------------------------------------------------------------------------
def reference_forward(query, key, value, *, factor, flag):
    q_b, q_l, q_h, q_c = query.shape
    v_l = value.shape[1]
    if q_l > v_l:
        pad = jnp.zeros((q_b, q_l - v_l, q_h, q_c), value.dtype)
        value = jnp.concatenate([value, pad], axis=1)
        key = jnp.concatenate([key, pad], axis=1)
    else:
        value = value[:, :q_l]
        key = key[:, :q_l]
    L = q_l
    qf = query.astype(jnp.float32)
    kf = key.astype(jnp.float32)
    corr = jnp.stack(
        [jnp.sum(jnp.roll(qf, -tau, axis=1) * kf, axis=1) for tau in range(L)],
        axis=1)                                                      # (B, L, H, C)
    top_k = int(factor * math.log(L))
    mean_value = jnp.mean(jnp.mean(corr, axis=-1), axis=-1)          # (B, L)
    _, idx = jax.lax.top_k(jnp.mean(mean_value, axis=0), top_k)
    weights = jax.nn.softmax(jnp.take(mean_value, idx, axis=1), axis=-1)
    agg = jnp.zeros_like(value)
    for i in range(top_k):
        rolled = jnp.roll(value, -idx[i], axis=1)
        agg = agg + rolled * weights[:, i][:, None, None, None]
    return agg


if __name__ == "__main__":
    B, L, H, C = 2, 8, 4, 32
    HEADS, FACTOR, FLAG = H, 1, "train"          # top_k = int(1 * log(8)) = 2

    k0 = jax.random.PRNGKey(0)
    kq, kk, kv = jax.random.split(k0, 3)
    query = jax.random.normal(kq, (B, L, H, C), jnp.float32)
    key_t = jax.random.normal(kk, (B, L, H, C), jnp.float32)
    value = jax.random.normal(kv, (B, L, H, C), jnp.float32)

    fwd = jax.jit(functools.partial(
        auto_correlation_forward, heads=HEADS, factor=FACTOR, flag=FLAG))
    out = jax.block_until_ready(fwd(query, key_t, value))

    ref = reference_forward(query, key_t, value, factor=FACTOR, flag=FLAG)

    assert out.shape == (B, L, H, C)
    assert out.dtype == value.dtype
    assert bool(jnp.allclose(out, ref, atol=1e-4, rtol=1e-4))
    print("KERNEL_OK")
</pallas_src>

<mosaic_0001>
module attributes {stable_mosaic.version = 11 : i64} {
  func.func @_corr_mean_kernel(%arg0: i32, %arg1: memref<2x8x128xf32, #tpu.memory_space<vmem>>, %arg2: memref<2x8x128xf32, #tpu.memory_space<vmem>>, %arg3: memref<2x8x1xf32, #tpu.memory_space<vmem>>, %arg4: memref<16x8xf32, #tpu.memory_space<vmem>>) attributes {dimension_semantics = [#tpu.dimension_semantics<parallel>], iteration_bounds = array<i64: 1>, scalar_prefetch = 0 : i64, scratch_operands = 1 : i64, tpu.core_type = #tpu.core_type<tc>, window_params = [{transform_indices = @transform_0, window_bounds = array<i64: 2, 8, 128>}, {transform_indices = @transform_1, window_bounds = array<i64: 2, 8, 128>}, {transform_indices = @transform_2, window_bounds = array<i64: 2, 8, 1>}]} {
    %c0 = arith.constant 0 : index
    %c0_0 = arith.constant 0 : index
    %c0_1 = arith.constant 0 : index
    %0 = vector.load %arg1[%c0, %c0_0, %c0_1] : memref<2x8x128xf32, #tpu.memory_space<vmem>>, vector<1x8x128xf32>
    %1 = vector.shape_cast %0 : vector<1x8x128xf32> to vector<8x128xf32>
    %c0_2 = arith.constant 0 : index
    %c0_3 = arith.constant 0 : index
    %c0_4 = arith.constant 0 : index
    %2 = vector.load %arg2[%c0_2, %c0_3, %c0_4] : memref<2x8x128xf32, #tpu.memory_space<vmem>>, vector<1x8x128xf32>
    %3 = vector.shape_cast %2 : vector<1x8x128xf32> to vector<8x128xf32>
    %cst = arith.constant dense<0.000000e+00> : vector<8x8xf32>
    %4 = tpu.matmul %1, %3, %cst {dimension_numbers = #tpu.dot_dimension_numbers<[1], [1], [0], [0], [0, 0, 1, 0], [], []>} : vector<8x128xf32>, vector<8x128xf32>, vector<8x8xf32> -> vector<8x8xf32>
    %c0_5 = arith.constant 0 : index
    %c0_6 = arith.constant 0 : index
    %5 = vector.load %arg4[%c0_5, %c0_6] : memref<16x8xf32, #tpu.memory_space<vmem>>, vector<8x8xf32>
    tpu.vector_store %arg4[%c0_5, %c0_6], %4 {strides = array<i32>} : memref<16x8xf32, #tpu.memory_space<vmem>>, vector<8x8xf32>,
    %c8 = arith.constant 8 : index
    %c0_7 = arith.constant 0 : index
    %6 = vector.load %arg4[%c8, %c0_7] : memref<16x8xf32, #tpu.memory_space<vmem>>, vector<8x8xf32>
    tpu.vector_store %arg4[%c8, %c0_7], %4 {strides = array<i32>} : memref<16x8xf32, #tpu.memory_space<vmem>>, vector<8x8xf32>,
    %7 = tpu.iota {dimensions = array<i32: 1>} : vector<8x8xi32>
    %cst_8 = arith.constant 0.000000e+00 : f32
    %8 = vector.broadcast %cst_8 : f32 to vector<8x8xf32>
    %c0_i32 = arith.constant 0 : i32
    %c8_i32 = arith.constant 8 : i32
    %9 = arith.addi %c0_i32, %c8_i32 : i32
    %c1_i32 = arith.constant 1 : i32
    %10 = scf.for %arg5 = %c0_i32 to %9 step %c1_i32 iter_args(%arg6 = %8) -> (vector<8x8xf32>)  : i32 {
      %36 = arith.index_cast %arg5 : i32 to index
      %c0_35 = arith.constant 0 : index
      %37 = vector.load %arg4[%36, %c0_35] : memref<16x8xf32, #tpu.memory_space<vmem>>, vector<8x8xf32>
      %38 = vector.broadcast %arg5 : i32 to vector<8x8xi32>
      %39 = arith.cmpi eq, %7, %38 : vector<8x8xi32>
      %cst_36 = arith.constant 0.000000e+00 : f32
      %40 = vector.broadcast %cst_36 : f32 to vector<8x8xf32>
      %41 = arith.select %39, %37, %40 : vector<8x8xi1>, vector<8x8xf32>
      %42 = arith.addf %arg6, %41 : vector<8x8xf32>
      scf.yield %42 : vector<8x8xf32>
    }
    %c8_i32_9 = arith.constant 8 : i32
    %cst_10 = arith.constant dense<0.000000e+00> : vector<8xf32>
    %11 = vector.multi_reduction <add>, %10, %cst_10 [1] : vector<8x8xf32> to vector<8xf32>
    %12 = vector.shape_cast %11 : vector<8xf32> to vector<8x1xf32>
    %cst_11 = arith.constant 7.812500e-03 : f32
    %13 = vector.broadcast %cst_11 : f32 to vector<8x1xf32>
    %14 = arith.mulf %12, %13 : vector<8x1xf32>
    %c0_12 = arith.constant 0 : index
    %c0_13 = arith.constant 0 : index
    %c0_14 = arith.constant 0 : index
    %15 = vector.load %arg3[%c0_12, %c0_13, %c0_14] : memref<2x8x1xf32, #tpu.memory_space<vmem>>, vector<1x8x1xf32>
    %16 = vector.shape_cast %15 : vector<1x8x1xf32> to vector<8x1xf32>
    %17 = vector.shape_cast %14 : vector<8x1xf32> to vector<1x8x1xf32>
    tpu.vector_store %arg3[%c0_12, %c0_13, %c0_14], %17 {strides = array<i32>} : memref<2x8x1xf32, #tpu.memory_space<vmem>>, vector<1x8x1xf32>,
    %c1 = arith.constant 1 : index
    %c0_15 = arith.constant 0 : index
    %c0_16 = arith.constant 0 : index
    %18 = vector.load %arg1[%c1, %c0_15, %c0_16] : memref<2x8x128xf32, #tpu.memory_space<vmem>>, vector<1x8x128xf32>
    %19 = vector.shape_cast %18 : vector<1x8x128xf32> to vector<8x128xf32>
    %c1_17 = arith.constant 1 : index
    %c0_18 = arith.constant 0 : index
    %c0_19 = arith.constant 0 : index
    %20 = vector.load %arg2[%c1_17, %c0_18, %c0_19] : memref<2x8x128xf32, #tpu.memory_space<vmem>>, vector<1x8x128xf32>
    %21 = vector.shape_cast %20 : vector<1x8x128xf32> to vector<8x128xf32>
    %cst_20 = arith.constant dense<0.000000e+00> : vector<8x8xf32>
    %22 = tpu.matmul %19, %21, %cst_20 {dimension_numbers = #tpu.dot_dimension_numbers<[1], [1], [0], [0], [0, 0, 1, 0], [], []>} : vector<8x128xf32>, vector<8x128xf32>, vector<8x8xf32> -> vector<8x8xf32>
    %c0_21 = arith.constant 0 : index
    %c0_22 = arith.constant 0 : index
    %23 = vector.load %arg4[%c0_21, %c0_22] : memref<16x8xf32, #tpu.memory_space<vmem>>, vector<8x8xf32>
    tpu.vector_store %arg4[%c0_21, %c0_22], %22 {strides = array<i32>} : memref<16x8xf32, #tpu.memory_space<vmem>>, vector<8x8xf32>,
    %c8_23 = arith.constant 8 : index
    %c0_24 = arith.constant 0 : index
    %24 = vector.load %arg4[%c8_23, %c0_24] : memref<16x8xf32, #tpu.memory_space<vmem>>, vector<8x8xf32>
    tpu.vector_store %arg4[%c8_23, %c0_24], %22 {strides = array<i32>} : memref<16x8xf32, #tpu.memory_space<vmem>>, vector<8x8xf32>,
    %25 = tpu.iota {dimensions = array<i32: 1>} : vector<8x8xi32>
    %cst_25 = arith.constant 0.000000e+00 : f32
    %26 = vector.broadcast %cst_25 : f32 to vector<8x8xf32>
    %c0_i32_26 = arith.constant 0 : i32
    %c8_i32_27 = arith.constant 8 : i32
    %27 = arith.addi %c0_i32_26, %c8_i32_27 : i32
    %c1_i32_28 = arith.constant 1 : i32
    %28 = scf.for %arg5 = %c0_i32_26 to %27 step %c1_i32_28 iter_args(%arg6 = %26) -> (vector<8x8xf32>)  : i32 {
      %36 = arith.index_cast %arg5 : i32 to index
      %c0_35 = arith.constant 0 : index
      %37 = vector.load %arg4[%36, %c0_35] : memref<16x8xf32, #tpu.memory_space<vmem>>, vector<8x8xf32>
      %38 = vector.broadcast %arg5 : i32 to vector<8x8xi32>
      %39 = arith.cmpi eq, %25, %38 : vector<8x8xi32>
      %cst_36 = arith.constant 0.000000e+00 : f32
      %40 = vector.broadcast %cst_36 : f32 to vector<8x8xf32>
      %41 = arith.select %39, %37, %40 : vector<8x8xi1>, vector<8x8xf32>
      %42 = arith.addf %arg6, %41 : vector<8x8xf32>
      scf.yield %42 : vector<8x8xf32>
    }
    %c8_i32_29 = arith.constant 8 : i32
    %cst_30 = arith.constant dense<0.000000e+00> : vector<8xf32>
    %29 = vector.multi_reduction <add>, %28, %cst_30 [1] : vector<8x8xf32> to vector<8xf32>
    %30 = vector.shape_cast %29 : vector<8xf32> to vector<8x1xf32>
    %cst_31 = arith.constant 7.812500e-03 : f32
    %31 = vector.broadcast %cst_31 : f32 to vector<8x1xf32>
    %32 = arith.mulf %30, %31 : vector<8x1xf32>
    %c1_32 = arith.constant 1 : index
    %c0_33 = arith.constant 0 : index
    %c0_34 = arith.constant 0 : index
    %33 = vector.load %arg3[%c1_32, %c0_33, %c0_34] : memref<2x8x1xf32, #tpu.memory_space<vmem>>, vector<1x8x1xf32>
    %34 = vector.shape_cast %33 : vector<1x8x1xf32> to vector<8x1xf32>
    %35 = vector.shape_cast %32 : vector<8x1xf32> to vector<1x8x1xf32>
    tpu.vector_store %arg3[%c1_32, %c0_33, %c0_34], %35 {strides = array<i32>} : memref<2x8x1xf32, #tpu.memory_space<vmem>>, vector<1x8x1xf32>,
    return
  }
  func.func @transform_0(%arg0: i32) -> (i32, i32, i32) {
    %c0_i32 = arith.constant 0 : i32
    %c0_i32_0 = arith.constant 0 : i32
    %c0_i32_1 = arith.constant 0 : i32
    return %arg0, %c0_i32, %c0_i32_0 : i32, i32, i32
  }
  func.func @transform_1(%arg0: i32) -> (i32, i32, i32) {
    %c0_i32 = arith.constant 0 : i32
    %c0_i32_0 = arith.constant 0 : i32
    %c0_i32_1 = arith.constant 0 : i32
    return %arg0, %c0_i32, %c0_i32_0 : i32, i32, i32
  }
  func.func @transform_2(%arg0: i32) -> (i32, i32, i32) {
    %c0_i32 = arith.constant 0 : i32
    %c0_i32_0 = arith.constant 0 : i32
    %c0_i32_1 = arith.constant 0 : i32
    return %arg0, %c0_i32, %c0_i32_0 : i32, i32, i32
  }
}

module attributes {stable_mosaic.version = 11 : i64} {
  func.func @_agg_kernel(%arg0: i32, %arg1: memref<2xi32, #tpu.memory_space<smem>>, %arg2: memref<4xf32, #tpu.memory_space<smem>>, %arg3: memref<2x8x128xf32, #tpu.memory_space<vmem>>, %arg4: memref<2x8x128xf32, #tpu.memory_space<vmem>>, %arg5: memref<16x128xf32, #tpu.memory_space<vmem>>) attributes {dimension_semantics = [#tpu.dimension_semantics<parallel>], iteration_bounds = array<i64: 1>, scalar_prefetch = 0 : i64, scratch_operands = 1 : i64, tpu.core_type = #tpu.core_type<tc>, window_params = [{transform_indices = @transform_0, window_bounds = array<i64: 2>}, {transform_indices = @transform_1, window_bounds = array<i64: 4>}, {transform_indices = @transform_2, window_bounds = array<i64: 2, 8, 128>}, {transform_indices = @transform_3, window_bounds = array<i64: 2, 8, 128>}]} {
    %c0 = arith.constant 0 : index
    %c0_0 = arith.constant 0 : index
    %c0_1 = arith.constant 0 : index
    %0 = vector.load %arg3[%c0, %c0_0, %c0_1] : memref<2x8x128xf32, #tpu.memory_space<vmem>>, vector<1x8x128xf32>
    %1 = vector.shape_cast %0 : vector<1x8x128xf32> to vector<8x128xf32>
    %c0_2 = arith.constant 0 : index
    %c0_3 = arith.constant 0 : index
    %2 = vector.load %arg5[%c0_2, %c0_3] : memref<16x128xf32, #tpu.memory_space<vmem>>, vector<8x128xf32>
    tpu.vector_store %arg5[%c0_2, %c0_3], %1 {strides = array<i32>} : memref<16x128xf32, #tpu.memory_space<vmem>>, vector<8x128xf32>,
    %c8 = arith.constant 8 : index
    %c0_4 = arith.constant 0 : index
    %3 = vector.load %arg5[%c8, %c0_4] : memref<16x128xf32, #tpu.memory_space<vmem>>, vector<8x128xf32>
    tpu.vector_store %arg5[%c8, %c0_4], %1 {strides = array<i32>} : memref<16x128xf32, #tpu.memory_space<vmem>>, vector<8x128xf32>,
    %c2_i32 = arith.constant 2 : i32
    %4 = arith.muli %arg0, %c2_i32 : i32
    %c0_i32 = arith.constant 0 : i32
    %5 = arith.addi %4, %c0_i32 : i32
    %c2_i32_5 = arith.constant 2 : i32
    %6 = arith.muli %5, %c2_i32_5 : i32
    %c0_6 = arith.constant 0 : index
    %7 = memref.load %arg1[%c0_6] : memref<2xi32, #tpu.memory_space<smem>>
    %8 = arith.index_cast %7 : i32 to index
    %c0_7 = arith.constant 0 : index
    %9 = vector.load %arg5[%8, %c0_7] : memref<16x128xf32, #tpu.memory_space<vmem>>, vector<8x128xf32>
    %c0_i32_8 = arith.constant 0 : i32
    %10 = arith.addi %6, %c0_i32_8 : i32
    %11 = arith.index_cast %10 : i32 to index
    %12 = memref.load %arg2[%11] : memref<4xf32, #tpu.memory_space<smem>>
    %13 = vector.broadcast %12 : f32 to vector<8x128xf32>
    %14 = arith.mulf %9, %13 : vector<8x128xf32>
    %c1 = arith.constant 1 : index
    %15 = memref.load %arg1[%c1] : memref<2xi32, #tpu.memory_space<smem>>
    %16 = arith.index_cast %15 : i32 to index
    %c0_9 = arith.constant 0 : index
    %17 = vector.load %arg5[%16, %c0_9] : memref<16x128xf32, #tpu.memory_space<vmem>>, vector<8x128xf32>
    %c1_i32 = arith.constant 1 : i32
    %18 = arith.addi %6, %c1_i32 : i32
    %19 = arith.index_cast %18 : i32 to index
    %20 = memref.load %arg2[%19] : memref<4xf32, #tpu.memory_space<smem>>
    %21 = vector.broadcast %20 : f32 to vector<8x128xf32>
    %22 = arith.mulf %17, %21 : vector<8x128xf32>
    %23 = arith.addf %14, %22 : vector<8x128xf32>
    %c0_10 = arith.constant 0 : index
    %c0_11 = arith.constant 0 : index
    %c0_12 = arith.constant 0 : index
    %24 = vector.load %arg4[%c0_10, %c0_11, %c0_12] : memref<2x8x128xf32, #tpu.memory_space<vmem>>, vector<1x8x128xf32>
    %25 = vector.shape_cast %24 : vector<1x8x128xf32> to vector<8x128xf32>
    %26 = vector.shape_cast %23 : vector<8x128xf32> to vector<1x8x128xf32>
    tpu.vector_store %arg4[%c0_10, %c0_11, %c0_12], %26 {strides = array<i32>} : memref<2x8x128xf32, #tpu.memory_space<vmem>>, vector<1x8x128xf32>,
    %c1_13 = arith.constant 1 : index
    %c0_14 = arith.constant 0 : index
    %c0_15 = arith.constant 0 : index
    %27 = vector.load %arg3[%c1_13, %c0_14, %c0_15] : memref<2x8x128xf32, #tpu.memory_space<vmem>>, vector<1x8x128xf32>
    %28 = vector.shape_cast %27 : vector<1x8x128xf32> to vector<8x128xf32>
    %c0_16 = arith.constant 0 : index
    %c0_17 = arith.constant 0 : index
    %29 = vector.load %arg5[%c0_16, %c0_17] : memref<16x128xf32, #tpu.memory_space<vmem>>, vector<8x128xf32>
    tpu.vector_store %arg5[%c0_16, %c0_17], %28 {strides = array<i32>} : memref<16x128xf32, #tpu.memory_space<vmem>>, vector<8x128xf32>,
    %c8_18 = arith.constant 8 : index
    %c0_19 = arith.constant 0 : index
    %30 = vector.load %arg5[%c8_18, %c0_19] : memref<16x128xf32, #tpu.memory_space<vmem>>, vector<8x128xf32>
    tpu.vector_store %arg5[%c8_18, %c0_19], %28 {strides = array<i32>} : memref<16x128xf32, #tpu.memory_space<vmem>>, vector<8x128xf32>,
    %c2_i32_20 = arith.constant 2 : i32
    %31 = arith.muli %arg0, %c2_i32_20 : i32
    %c1_i32_21 = arith.constant 1 : i32
    %32 = arith.addi %31, %c1_i32_21 : i32
    %c2_i32_22 = arith.constant 2 : i32
    %33 = arith.muli %32, %c2_i32_22 : i32
    %c0_23 = arith.constant 0 : index
    %34 = memref.load %arg1[%c0_23] : memref<2xi32, #tpu.memory_space<smem>>
    %35 = arith.index_cast %34 : i32 to index
    %c0_24 = arith.constant 0 : index
    %36 = vector.load %arg5[%35, %c0_24] : memref<16x128xf32, #tpu.memory_space<vmem>>, vector<8x128xf32>
    %c0_i32_25 = arith.constant 0 : i32
    %37 = arith.addi %33, %c0_i32_25 : i32
    %38 = arith.index_cast %37 : i32 to index
    %39 = memref.load %arg2[%38] : memref<4xf32, #tpu.memory_space<smem>>
    %40 = vector.broadcast %39 : f32 to vector<8x128xf32>
    %41 = arith.mulf %36, %40 : vector<8x128xf32>
    %c1_26 = arith.constant 1 : index
    %42 = memref.load %arg1[%c1_26] : memref<2xi32, #tpu.memory_space<smem>>
    %43 = arith.index_cast %42 : i32 to index
    %c0_27 = arith.constant 0 : index
    %44 = vector.load %arg5[%43, %c0_27] : memref<16x128xf32, #tpu.memory_space<vmem>>, vector<8x128xf32>
    %c1_i32_28 = arith.constant 1 : i32
    %45 = arith.addi %33, %c1_i32_28 : i32
    %46 = arith.index_cast %45 : i32 to index
    %47 = memref.load %arg2[%46] : memref<4xf32, #tpu.memory_space<smem>>
    %48 = vector.broadcast %47 : f32 to vector<8x128xf32>
    %49 = arith.mulf %44, %48 : vector<8x128xf32>
    %50 = arith.addf %41, %49 : vector<8x128xf32>
    %c1_29 = arith.constant 1 : index
    %c0_30 = arith.constant 0 : index
    %c0_31 = arith.constant 0 : index
    %51 = vector.load %arg4[%c1_29, %c0_30, %c0_31] : memref<2x8x128xf32, #tpu.memory_space<vmem>>, vector<1x8x128xf32>
    %52 = vector.shape_cast %51 : vector<1x8x128xf32> to vector<8x128xf32>
    %53 = vector.shape_cast %50 : vector<8x128xf32> to vector<1x8x128xf32>
    tpu.vector_store %arg4[%c1_29, %c0_30, %c0_31], %53 {strides = array<i32>} : memref<2x8x128xf32, #tpu.memory_space<vmem>>, vector<1x8x128xf32>,
    return
  }
  func.func @transform_0(%arg0: i32) -> i32 {
    %c0_i32 = arith.constant 0 : i32
    %c0_i32_0 = arith.constant 0 : i32
    return %c0_i32 : i32
  }
  func.func @transform_1(%arg0: i32) -> i32 {
    %c0_i32 = arith.constant 0 : i32
    %c0_i32_0 = arith.constant 0 : i32
    return %c0_i32 : i32
  }
  func.func @transform_2(%arg0: i32) -> (i32, i32, i32) {
    %c0_i32 = arith.constant 0 : i32
    %c0_i32_0 = arith.constant 0 : i32
    %c0_i32_1 = arith.constant 0 : i32
    return %arg0, %c0_i32, %c0_i32_0 : i32, i32, i32
  }
  func.func @transform_3(%arg0: i32) -> (i32, i32, i32) {
    %c0_i32 = arith.constant 0 : i32
    %c0_i32_0 = arith.constant 0 : i32
    %c0_i32_1 = arith.constant 0 : i32
    return %arg0, %c0_i32, %c0_i32_0 : i32, i32, i32
  }
}

</mosaic_0001>

<bundles_post_ra>
// kernel: auto_correlation_forward.2
= control target key start
LH: loop header
LB: loop body
LE: loop exit
PB: predicated region body
PF: predicated region fallthrough
CT: control target
= control target key end

     0   :  { %v36_v2 = vlaneseq  ;;  %vm33_vm0 = vcmask 64512   ;;  %v175_v5 = vmov 0.0   ;;  %s179_s13 = smov 0   ;;  %s232_s1 = inlined_call_operand.vmem [shape: f32[2,8,128], index: 1, kind: input, shape index: {}]   ;;  %s233_s2 = inlined_call_operand.vmem [shape: f32[2,8,1], index: 2, kind: output, shape index: {}]   ;;  %s234_s0 = inlined_call_operand.vmem [shape: f32[2,8,128], index: 0, kind: input, shape index: {}]  }
   0x1   :  { %v12_v0 = vld [vmem:[%s232_s1] sm:$0xff] }
   0x2   :  { %28 = vmatpush.xpose.msra.mxu0 %v12_v0  ;;  %v11_v1 = vld [vmem:[%s234_s0] sm:$0xff]  ;;  %v37_v3 = vand.u32 127, %v36_v2 }
   0x5   :  { %29 = vmatmul.f32.vlgmr.msra.gmra.mxu0 %v11_v1 }
  0x82   :  { %v30_v4 = vpop.f32.mrf.mxu0 }
  0x83   :  { %34 = vst.msk [vmem:[#allocation2] sm:$0xff] %vm33_vm0, %v30_v4 }
  0x84   :  { %35 = vst.msk [vmem:[#allocation2 + $0x8] sm:$0xff] %vm33_vm0, %v30_v4 }
  0x85 LB: > { %v47_v6 = vstv %s181_s13  ;;  %s45_s14 = scalar_lea.vmem [#allocation2], %s181_s13  ;;  %s43_s13 = sadd.s32 1, %s181_s13   ;;  %s181_s13 = sphi %s179_s13, %s43_s13   ;;  %v177_v5 = vphi %v175_v5, %v176_v5  }
  0x86   : > { %vm48_vm1 = vcmp.eq.s32.totalorder %v37_v3, %v47_v6  ;;  %p40_p0 = scmp.ge.s32.totalorder %s43_s13, 8  }
  0x87   :  { %v125_v10 = vld [vmem:[%s232_s1 + $0x8] sm:$0xff] (%p40_p0)  ;;  %vm55_vm2 = vcmask (%p40_p0), 7168   ;;  %v183_v16 = vmov (%p40_p0), 0.0   ;;  %s187_s1 = smov (%p40_p0), 0  }
  0x88   :  { %76 = vmatpush.xpose.msra.mxu1 (%p40_p0), %v125_v10  ;;  %v124_v12 = vld [vmem:[%s234_s0 + $0x8] sm:$0xff] (%p40_p0) }
  0x8b   : > { %v46_v7 = vld [vmem:[%s45_s14] sm:$0xff]  ;;  %42 = sbr.rel (!%p40_p0) target bundleno = 133 (0x85), region = 47  ;;  %77 = vmatmul.f32.vlgmr.msra.gmra.mxu1 (%p40_p0), %v124_v12 }
  0x8c   : > { %v49_v8 = vsel %vm48_vm1, %v46_v7, 0.0 }
  0x8d   : > { %v50_v9 = vadd.f32 %v177_v5, %v49_v8  }
  0x8f   : > { %v176_v5 = vmov %v50_v9   ;;  %v51_v11 = vsel (%p40_p0), %vm33_vm0, %v50_v9, 0.0 }
  0x90   :  { %52 = vadd.xlane.f32.xlu0 %v51_v11 }
 0x103   :  { %v53_v13 = vpop.xlane.xlu0 %52 }
 0x104   :  { %v54_v14 = vmul.f32 0.0078125, %v53_v13 }
 0x106   :  { %56 = vst.msk [vmem:[%s233_s2] sm:$0xff] %vm55_vm2, %v54_v14 }
 0x108   :  { %v78_v15 = vpop.f32.mrf.mxu1 }
 0x109   :  { %81 = vst.msk [vmem:[#allocation2] sm:$0xff] %vm33_vm0, %v78_v15 }
 0x10a   :  { %82 = vst.msk [vmem:[#allocation2 + $0x8] sm:$0xff] %vm33_vm0, %v78_v15 }
 0x10b LB: > { %v92_v17 = vstv %s189_s1  ;;  %s90_s0 = scalar_lea.vmem [#allocation2], %s189_s1  ;;  %s88_s1 = sadd.s32 1, %s189_s1   ;;  %s189_s1 = sphi %s187_s1, %s88_s1   ;;  %v185_v16 = vphi %v183_v16, %v184_v16  }
 0x10c   : > { %vm93_vm3 = vcmp.eq.s32.totalorder %v37_v3, %v92_v17  ;;  %p85_p1 = scmp.ge.s32.totalorder %s88_s1, 8  }
 0x111   : > { %v91_v18 = vld [vmem:[%s90_s0] sm:$0xff]  ;;  %87 = sbr.rel (!%p85_p1) target bundleno = 267 (0x10b), region = 58 }
 0x112   : > { %v94_v19 = vsel %vm93_vm3, %v91_v18, 0.0 }
 0x113   : > { %v95_v20 = vadd.f32 %v185_v16, %v94_v19  }
 0x115   : > { %v184_v16 = vmov %v95_v20   ;;  %v96_v21 = vsel (%p85_p1), %vm33_vm0, %v95_v20, 0.0 }
 0x116   :  { %97 = vadd.xlane.f32.xlu0 %v96_v21 }
 0x189   :  { %v98_v22 = vpop.xlane.xlu0 %97 }
 0x18a   :  { %v99_v23 = vmul.f32 0.0078125, %v98_v22 }
 0x18c   :  { %126 = vst.msk [vmem:[%s233_s2 + $0x8] sm:$0xff] %vm55_vm2, %v99_v23 }

// kernel: auto_correlation_forward.3
= control target key start
LH: loop header
LB: loop body
LE: loop exit
PB: predicated region body
PF: predicated region fallthrough
CT: control target
= control target key end

     0   :  { %8 = vsyncpa [#allocation4], 0  ;;  %s168_s0 = inlined_call_operand.vmem [shape: s32[2], index: 0, kind: input, shape index: {}]   ;;  %s169_s1 = inlined_call_operand.vmem [shape: f32[4], index: 1, kind: input, shape index: {}]   ;;  %s170_s2 = inlined_call_operand.vmem [shape: f32[2,8,128], index: 2, kind: input, shape index: {}]   ;;  %s171_s3 = inlined_call_operand.vmem [shape: f32[2,8,128], index: 3, kind: output, shape index: {}]  }
   0x1   :  { %s15_s14 = sshll.u32 %s168_s0, 4  ;;  %s16_s14 = int_to_ptr.vmem [resolvable:$true] %s15_s14 }
   0x2   :  { %9 = vsyncpa [#allocation6], 0  ;;  %s24_s17 = sshll.u32 %s169_s1, 4  ;;  %s128_s18 = smov [#allocation3]   ;;  %s25_s17 = int_to_ptr.vmem [resolvable:$true] %s24_s17 }
   0x3   :  { %18 = dma.vmem_to_smem %s16_s14, 16, %s128_s18, [#allocation4]  }
   0x4   :  { %s129_s19 = smov [#allocation5]  }
   0x5   :  { %27 = dma.vmem_to_smem %s25_s17, 16, %s129_s19, [#allocation6]  }
   0x6   :  { %124 = dma.done.wait [#allocation4], 16  }
   0x7   :  { %125 = vsyncadd [#allocation4], 4294967280 }
   0x8   :  { %126 = dma.done.wait [#allocation6], 16  }
   0x9   :  { %127 = vsyncadd [#allocation6], 4294967280 }
   0xa   :  { %38 = sfence }
   0xb   :  { %v39_v0 = vld [vmem:[%s170_s2] sm:$0xff]  ;;  %s43_s0 = sld [smem:[#allocation3]]  ;;  %v93_v1 = vld [vmem:[%s170_s2 + $0x8] sm:$0xff] }
   0xc   :  { %40 = vst [vmem:[#allocation2] sm:$0xff] %v39_v0  ;;  %s91_s22 = sld [smem:[#allocation3 + $0x1]] }
   0xd   :  { %41 = vst [vmem:[#allocation2 + $0x8] sm:$0xff] %v39_v0  ;;  %s46_s23 = sld [smem:[#allocation5]] }
   0xe   :  { %s92_s1 = sld [smem:[#allocation5 + $0x1]] }
   0xf   :  { %s94_s26 = sld [smem:[#allocation5 + $0x2]] }
  0x10   :  { %s96_s27 = sld [smem:[#allocation5 + $0x3]] }
  0x11   :  { %s44_s28 = scalar_lea.vmem [#allocation2], %s43_s0 }
  0x12   :  { %s50_s29 = scalar_lea.vmem [#allocation2], %s91_s22 }
  0x13   :  { %v47_v2 = vstv %s46_s23 }
  0x14   :  { %v45_v3 = vld [vmem:[%s44_s28] sm:$0xff]  ;;  %v54_v5 = vstv %s92_s1 }
  0x15   :  { %v51_v4 = vld [vmem:[%s50_s29] sm:$0xff]  ;;  %v48_v6 = vmul.f32 %v47_v2, %v45_v3  ;;  %v69_v9 = vstv %s94_s26 }
  0x16   :  { %60 = vst [vmem:[#allocation2] sm:$0xff] %v93_v1  ;;  %v55_v7 = vmul.f32 %v54_v5, %v51_v4  ;;  %v76_v10 = vstv %s96_s27 }
  0x17   :  { %61 = vst [vmem:[#allocation2 + $0x8] sm:$0xff] %v93_v1 }
  0x18   :  { %v56_v8 = vadd.f32 %v55_v7, %v48_v6 }
  0x1a   :  { %57 = vst [vmem:[%s171_s3] sm:$0xff] %v56_v8 }
  0x1e   :  { %v67_v11 = vld [vmem:[%s44_s28] sm:$0xff] }
  0x1f   :  { %v73_v12 = vld [vmem:[%s50_s29] sm:$0xff]  ;;  %v70_v13 = vmul.f32 %v69_v9, %v67_v11 }
  0x20   :  { %v77_v14 = vmul.f32 %v76_v10, %v73_v12 }
  0x22   :  { %v78_v15 = vadd.f32 %v77_v14, %v70_v13 }
  0x24   :  { %97 = vst [vmem:[%s171_s3 + $0x8] sm:$0xff] %v78_v15 }
  0x25   :  { %85 = vsyncpa [#allocation4], 1 }
  0x26   :  { %86 = vsyncpa [#allocation6], 1 }

</bundles_post_ra>
